<compile_context>
chip_gen: v5e
topology: v5e:2x2
jax: 0.10.0
libtpu: 0.0.40
codegen_flags: <defaults>
</compile_context>

<pallas_src>
import jax
import jax.numpy as jnp
from jax.experimental import pallas as pl
from jax.experimental.pallas import tpu as pltpu


def _round_up(x: int, m: int) -> int:
    return (x + m - 1) // m * m


def mlp_kernel(x_ref, w1_ref, b1_ref, w2_ref, b2_ref, o_ref):
    # fc1: bf16 operands, f32 accumulation on the MXU.
    h = jnp.dot(x_ref[...], w1_ref[...], preferred_element_type=jnp.float32)
    # bias + ReLU in f32 (v5e VPU has no bf16).
    h = jnp.maximum(h + b1_ref[...], 0.0)
    # fc2: cast activations back to the operand dtype for the second MXU pass.
    y = jnp.dot(h.astype(w2_ref.dtype), w2_ref[...],
                preferred_element_type=jnp.float32)
    o_ref[...] = (y + b2_ref[...]).astype(o_ref.dtype)


def micro_trend_forward(x, w1, b1, w2, b2, *, tile_b=512,
                        operand_dtype=jnp.bfloat16):
    """Fused MLP forward.

    x : (B, in_dim) f32
    w1: (in_dim, hidden) f32   (transposed vs. PyTorch's [out, in])
    b1: (hidden,) f32
    w2: (hidden, out_dim) f32
    b2: (out_dim,) f32
    returns (B, out_dim) f32
    """
    B, in_dim = x.shape
    hid = w1.shape[1]
    out_dim = w2.shape[1]

    # Padded (lane/sublane friendly) sizes.
    in_pad = _round_up(in_dim, 16)     # small contraction dim, keep HBM traffic low
    hid_pad = _round_up(hid, 128)      # lane-dense hidden activations
    out_pad = _round_up(out_dim, 128)  # lane-dense output -> unmasked stores

    # Batch tiling: big tiles at big B, single step at tiny B.
    tile_b = min(tile_b, _round_up(B, 8))
    b_pad = _round_up(B, tile_b)

    od = operand_dtype
    # Zero-pad operands once in the wrapper. Weights are ~KBs; zero columns/rows
    # contribute exactly 0 to the result, padded batch rows are sliced off below.
    xp = jnp.zeros((b_pad, in_pad), od).at[:B, :in_dim].set(x.astype(od))
    w1p = jnp.zeros((in_pad, hid_pad), od).at[:in_dim, :hid].set(w1.astype(od))
    b1p = jnp.zeros((1, hid_pad), jnp.float32).at[0, :hid].set(b1.reshape(-1))
    w2p = jnp.zeros((hid_pad, out_pad), od).at[:hid, :out_dim].set(w2.astype(od))
    b2p = jnp.zeros((1, out_pad), jnp.float32).at[0, :out_dim].set(b2.reshape(-1))

    grid = (b_pad // tile_b,)

    out_padded = pl.pallas_call(
        mlp_kernel,
        out_shape=jax.ShapeDtypeStruct((b_pad, out_pad), jnp.float32),
        grid=grid,
        in_specs=[
            # x: one batch tile per grid step (double-buffered DMA).
            pl.BlockSpec((tile_b, in_pad), lambda i: (i, 0)),
            # Weights / biases: constant index_map -> loaded once, VMEM-resident.
            pl.BlockSpec((in_pad, hid_pad), lambda i: (0, 0)),
            pl.BlockSpec((1, hid_pad), lambda i: (0, 0)),
            pl.BlockSpec((hid_pad, out_pad), lambda i: (0, 0)),
            pl.BlockSpec((1, out_pad), lambda i: (0, 0)),
        ],
        out_specs=pl.BlockSpec((tile_b, out_pad), lambda i: (i, 0)),
        compiler_params=pltpu.CompilerParams(
            # Batch axis is independent -> shardable across v7x's 2 TensorCores.
            dimension_semantics=("parallel",),
        ),
    )(xp, w1p, b1p, w2p, b2p)

    return out_padded[:B, :out_dim]


def init_params(key, input_dim=10, hidden_dim=32, out_dim=2):
    """Deterministic init mimicking nn.Linear's U(-1/sqrt(fan_in), 1/sqrt(fan_in))."""
    k1, k2, k3, k4 = jax.random.split(key, 4)
    bound1 = 1.0 / jnp.sqrt(input_dim)
    bound2 = 1.0 / jnp.sqrt(hidden_dim)
    # Stored as [in, out] (transposed vs. PyTorch's [out, in]) so kernel does x @ W.
    w1 = jax.random.uniform(k1, (input_dim, hidden_dim), jnp.float32, -bound1, bound1)
    b1 = jax.random.uniform(k2, (hidden_dim,), jnp.float32, -bound1, bound1)
    w2 = jax.random.uniform(k3, (hidden_dim, out_dim), jnp.float32, -bound2, bound2)
    b2 = jax.random.uniform(k4, (out_dim,), jnp.float32, -bound2, bound2)
    return w1, b1, w2, b2


if __name__ == "__main__":
    input_dim, hidden_dim, out_dim = 10, 32, 2
    batch = 8

    key = jax.random.PRNGKey(0)
    kx, kp = jax.random.split(key)
    x = jax.random.normal(kx, (batch, input_dim), dtype=jnp.float32)
    w1, b1, w2, b2 = init_params(kp, input_dim, hidden_dim, out_dim)

    out = micro_trend_forward(x, w1, b1, w2, b2)
    out = jax.block_until_ready(out)
    assert out.shape == (batch, out_dim)

    # Reference mirroring the kernel's numerics (bf16 operands, f32 accumulation).
    x_od, w1_od, w2_od = (a.astype(jnp.bfloat16) for a in (x, w1, w2))
    h_ref = jnp.maximum(
        jnp.dot(x_od, w1_od, preferred_element_type=jnp.float32) + b1[None, :], 0.0)
    ref = jnp.dot(h_ref.astype(jnp.bfloat16), w2_od,
                  preferred_element_type=jnp.float32) + b2[None, :]
    assert jnp.allclose(out, ref, atol=2e-3, rtol=2e-3)

    # Loose sanity check against the pure-f32 forward (bf16 operand rounding only).
    ref_f32 = jnp.maximum(x @ w1 + b1[None, :], 0.0) @ w2 + b2[None, :]
    assert jnp.allclose(out, ref_f32, atol=5e-2, rtol=5e-2)

    print("KERNEL_OK")
</pallas_src>

<mosaic_0001>
module attributes {stable_mosaic.version = 11 : i64} {
  func.func @mlp_kernel(%arg0: i32, %arg1: memref<8x16xbf16, #tpu.memory_space<vmem>>, %arg2: memref<16x128xbf16, #tpu.memory_space<vmem>>, %arg3: memref<1x128xf32, #tpu.memory_space<vmem>>, %arg4: memref<128x128xbf16, #tpu.memory_space<vmem>>, %arg5: memref<1x128xf32, #tpu.memory_space<vmem>>, %arg6: memref<8x128xf32, #tpu.memory_space<vmem>>) attributes {dimension_semantics = [#tpu.dimension_semantics<parallel>], iteration_bounds = array<i64: 1>, scalar_prefetch = 0 : i64, scratch_operands = 0 : i64, tpu.core_type = #tpu.core_type<tc>, window_params = [{transform_indices = @transform_0, window_bounds = array<i64: 8, 16>}, {pipeline_mode = #tpu.pipeline_mode<synchronous>, transform_indices = @transform_1, window_bounds = array<i64: 16, 128>}, {pipeline_mode = #tpu.pipeline_mode<synchronous>, transform_indices = @transform_2, window_bounds = array<i64: 1, 128>}, {pipeline_mode = #tpu.pipeline_mode<synchronous>, transform_indices = @transform_3, window_bounds = array<i64: 128, 128>}, {pipeline_mode = #tpu.pipeline_mode<synchronous>, transform_indices = @transform_4, window_bounds = array<i64: 1, 128>}, {transform_indices = @transform_5, window_bounds = array<i64: 8, 128>}]} {
    %c0 = arith.constant 0 : index
    %c0_0 = arith.constant 0 : index
    %0 = vector.load %arg1[%c0, %c0_0] : memref<8x16xbf16, #tpu.memory_space<vmem>>, vector<8x16xbf16>
    %c0_1 = arith.constant 0 : index
    %c0_2 = arith.constant 0 : index
    %1 = vector.load %arg2[%c0_1, %c0_2] : memref<16x128xbf16, #tpu.memory_space<vmem>>, vector<16x128xbf16>
    %cst = arith.constant dense<0.000000e+00> : vector<8x128xf32>
    %2 = tpu.matmul %0, %1, %cst {dimension_numbers = #tpu.dot_dimension_numbers<[1], [0], [0], [1], [0, 0, 1, 1], [], []>} : vector<8x16xbf16>, vector<16x128xbf16>, vector<8x128xf32> -> vector<8x128xf32>
    %c0_3 = arith.constant 0 : index
    %c0_4 = arith.constant 0 : index
    %3 = vector.load %arg3[%c0_3, %c0_4] : memref<1x128xf32, #tpu.memory_space<vmem>>, vector<1x128xf32>
    %4 = vector.broadcast %3 : vector<1x128xf32> to vector<8x128xf32>
    %5 = arith.addf %2, %4 : vector<8x128xf32>
    %cst_5 = arith.constant 0.000000e+00 : f32
    %6 = vector.broadcast %cst_5 : f32 to vector<8x128xf32>
    %7 = arith.maximumf %5, %6 : vector<8x128xf32>
    %8 = arith.truncf %7 : vector<8x128xf32> to vector<8x128xbf16>
    %c0_6 = arith.constant 0 : index
    %c0_7 = arith.constant 0 : index
    %9 = vector.load %arg4[%c0_6, %c0_7] : memref<128x128xbf16, #tpu.memory_space<vmem>>, vector<128x128xbf16>
    %cst_8 = arith.constant dense<0.000000e+00> : vector<8x128xf32>
    %10 = tpu.matmul %8, %9, %cst_8 {dimension_numbers = #tpu.dot_dimension_numbers<[1], [0], [0], [1], [0, 0, 1, 1], [], []>} : vector<8x128xbf16>, vector<128x128xbf16>, vector<8x128xf32> -> vector<8x128xf32>
    %c0_9 = arith.constant 0 : index
    %c0_10 = arith.constant 0 : index
    %11 = vector.load %arg5[%c0_9, %c0_10] : memref<1x128xf32, #tpu.memory_space<vmem>>, vector<1x128xf32>
    %12 = vector.broadcast %11 : vector<1x128xf32> to vector<8x128xf32>
    %13 = arith.addf %10, %12 : vector<8x128xf32>
    %c0_11 = arith.constant 0 : index
    %c0_12 = arith.constant 0 : index
    %14 = vector.load %arg6[%c0_11, %c0_12] : memref<8x128xf32, #tpu.memory_space<vmem>>, vector<8x128xf32>
    tpu.vector_store %arg6[%c0_11, %c0_12], %13 {strides = array<i32>} : memref<8x128xf32, #tpu.memory_space<vmem>>, vector<8x128xf32>,
    return
  }
  func.func @transform_0(%arg0: i32) -> (i32, i32) {
    %c0_i32 = arith.constant 0 : i32
    %c0_i32_0 = arith.constant 0 : i32
    return %arg0, %c0_i32 : i32, i32
  }
  func.func @transform_1(%arg0: i32) -> (i32, i32) {
    %c0_i32 = arith.constant 0 : i32
    %c0_i32_0 = arith.constant 0 : i32
    %c0_i32_1 = arith.constant 0 : i32
    return %c0_i32, %c0_i32_0 : i32, i32
  }
  func.func @transform_2(%arg0: i32) -> (i32, i32) {
    %c0_i32 = arith.constant 0 : i32
    %c0_i32_0 = arith.constant 0 : i32
    %c0_i32_1 = arith.constant 0 : i32
    return %c0_i32, %c0_i32_0 : i32, i32
  }
  func.func @transform_3(%arg0: i32) -> (i32, i32) {
    %c0_i32 = arith.constant 0 : i32
    %c0_i32_0 = arith.constant 0 : i32
    %c0_i32_1 = arith.constant 0 : i32
    return %c0_i32, %c0_i32_0 : i32, i32
  }
  func.func @transform_4(%arg0: i32) -> (i32, i32) {
    %c0_i32 = arith.constant 0 : i32
    %c0_i32_0 = arith.constant 0 : i32
    %c0_i32_1 = arith.constant 0 : i32
    return %c0_i32, %c0_i32_0 : i32, i32
  }
  func.func @transform_5(%arg0: i32) -> (i32, i32) {
    %c0_i32 = arith.constant 0 : i32
    %c0_i32_0 = arith.constant 0 : i32
    return %arg0, %c0_i32 : i32, i32
  }
}

</mosaic_0001>

<bundles_post_ra>
// kernel: tpu_custom_call.1
= control target key start
LH: loop header
LB: loop body
LE: loop exit
PB: predicated region body
PF: predicated region fallthrough
CT: control target
= control target key end

     0   :  { %10 = vsyncpa [#allocation3], 0  ;;  %s409_s0 = inlined_call_operand.hbm [shape: bf16[8,16], index: 0, kind: input, shape index: {}]   ;;  %s410_s1 = inlined_call_operand.hbm [shape: bf16[16,128], index: 1, kind: input, shape index: {}]   ;;  %s411_s2 = inlined_call_operand.vmem [shape: f32[1,128], index: 2, kind: input, shape index: {}]   ;;  %s412_s3 = inlined_call_operand.hbm [shape: bf16[128,128], index: 3, kind: input, shape index: {}]   ;;  %s413_s4 = inlined_call_operand.vmem [shape: f32[1,128], index: 4, kind: input, shape index: {}]   ;;  %s414_s5 = inlined_call_operand.hbm [shape: f32[8,128], index: 5, kind: output, shape index: {}]  }
   0x1   :  { %11 = vsyncpa [#allocation6], 0  ;;  %s28_s20 = sshll.u32 %s410_s1, 4  ;;  %s29_s20 = int_to_ptr.hbm [resolvable:$true] %s28_s20 }
   0x2   :  { %12 = vsyncpa [#allocation4], 0  ;;  %s355_s21 = smov [#allocation5]   ;;  %s18_s25 = sshll.u32 %s409_s0, 4  ;;  %s19_s25 = int_to_ptr.hbm [resolvable:$true] %s18_s25 }
   0x3   :  { %s30_s22 = sshll.u32 %s355_s21, 4  ;;  %s356_s26 = smov 64   ;;  %s31_s22 = int_to_ptr.vmem [resolvable:$true] %s30_s22 }
   0x4   :  { %s357_s27 = smov 4   ;;  %s358_s28 = smov [#allocation2]  }
   0x5   :  { %36 = dma.hbm_to_vmem [thread:$0]  %s29_s20, 128, %s31_s22, [#allocation6], %s356_s26, %s356_s26, %s357_s27  }
   0x6   :  { %s20_s29 = sshll.u32 %s358_s28, 4  ;;  %s43_s7 = sshll.u32 %s412_s3, 4  ;;  %s21_s29 = int_to_ptr.vmem [resolvable:$true] %s20_s29  ;;  %s44_s7 = int_to_ptr.hbm [resolvable:$true] %s43_s7 }
   0x7   :  { %23 = dma.hbm_to_vmem [thread:$0]  %s19_s25, 64, %s21_s29, [#allocation3]  }
   0x8   :  { %s359_s1 = smov [#allocation7]  }
   0x9   :  { %s45_s8 = sshll.u32 %s359_s1, 4  ;;  %s46_s8 = int_to_ptr.vmem [resolvable:$true] %s45_s8 }
   0xa   :  { %51 = dma.hbm_to_vmem [thread:$0]  %s44_s7, 1024, %s46_s8, [#allocation6], %s356_s26, %s356_s26, %s357_s27  }
   0xb   :  { %349 = dma.done.wait [#allocation3], 64  }
   0xc   :  { %350 = vsyncadd [#allocation3], 4294967232 }
   0xd   :  { %351 = dma.done.wait [#allocation6], 1152  }
   0xe   :  { %352 = vsyncadd [#allocation6], 4294966144  ;;  %v236_v0 = vld [vmem:[#allocation5] sm:$0xff]  ;;  %v67_v2 = vld [vmem:[#allocation2] sm:$0xf]  ;;  %vm80_vm0 = vcmask 130048  }
   0xf   :  { %v244_v1 = vld [vmem:[#allocation7 + $0x38] sm:$0xff]  ;;  %91 = vmatpush.bf16.msra.mxu0 %v236_v0  ;;  %v243_v3 = vld [vmem:[#allocation7 + $0x30] sm:$0xff]  ;;  %v242_v4 = vld [vmem:[#allocation7 + $0x28] sm:$0xff]  ;;  %s360_s11 = smov [#allocation8]   ;;  %s188_s15 = sshll.u32 %s414_s5, 4  ;;  %s189_s15 = int_to_ptr.hbm [resolvable:$true] %s188_s15 }
  0x10   :  { %167 = vmatpush.bf16.msra.mxu1 %v244_v1  ;;  %v241_v5 = vld [vmem:[#allocation7 + $0x20] sm:$0xff]  ;;  %v240_v6 = vld [vmem:[#allocation7 + $0x18] sm:$0xff]  ;;  %v239_v7 = vld [vmem:[#allocation7 + $0x10] sm:$0xff]  ;;  %s186_s12 = sshll.u32 %s360_s11, 4  ;;  %s187_s12 = int_to_ptr.vmem [resolvable:$true] %s186_s12 }
  0x11   :  { %v238_v8 = vld [vmem:[#allocation7 + $0x8] sm:$0xff]  ;;  %v237_v9 = vld [vmem:[#allocation7] sm:$0xff]  ;;  %v251_v10 = vld [vmem:[%s411_s2] ss:$0 sm:$0xff] }
  0x12   :  { %203 = vmatmul.msk.bf16.vlgmr.msra.gmra.mxu0 %vm80_vm0, %v67_v2  ;;  %v252_v16 = vld [vmem:[%s413_s4] ss:$0 sm:$0xff] }
  0x14   :  { %168 = vmatpush.bf16.msra.mxu1 %v243_v3 }
  0x18   :  { %169 = vmatpush.bf16.msra.mxu1 %v242_v4 }
  0x1c   :  { %170 = vmatpush.bf16.msra.mxu1 %v241_v5 }
  0x20   :  { %171 = vmatpush.bf16.msra.mxu1 %v240_v6 }
  0x24   :  { %172 = vmatpush.bf16.msra.mxu1 %v239_v7 }
  0x28   :  { %173 = vmatpush.bf16.msra.mxu1 %v238_v8 }
  0x2c   :  { %174 = vmatpush.bf16.msra.mxu1 %v237_v9 }
  0x8f   :  { %v93_v11 = vpop.f32.mrf.mxu0 }
  0x90   :  { %v94_v12 = vadd.f32 %v251_v10, %v93_v11 }
  0x92   :  { %v97_v13 = vmax.f32 %v94_v12, 0.0 }
  0x94   :  { %v98_v14 = vpack.c.bf16 %v97_v13, %v97_v13 }
  0x96   :  { %175 = vmatmul.bf16.vlgmr.msra.gmra.mxu1 %v98_v14 }
  0x97   :  { %v95_v15 = vpop.f32.mrf.mxu0 }
 0x113   :  { %v176_v17 = vpop.f32.mrf.mxu1 }
 0x114   :  { %v177_v18 = vadd.f32 %v252_v16, %v176_v17 }
 0x116   :  { %180 = vst [vmem:[#allocation8] sm:$0xff] %v177_v18 }
 0x117   :  { %191 = dma.vmem_to_hbm [thread:$0]  %s187_s12, 128, %s189_s15, [#allocation4]  }
 0x11b   :  { %v178_v19 = vpop.f32.mrf.mxu1 }
 0x11c   :  { %353 = dma.done.wait [#allocation4], 128  }
 0x11d   :  { %354 = vsyncadd [#allocation4], 4294967168 }
 0x11e   :  { %196 = vsyncpa [#allocation3], 1 }
 0x11f   :  { %197 = vsyncpa [#allocation6], 1 }
 0x120   :  { %198 = vsyncpa [#allocation4], 1 }

</bundles_post_ra>
